<compile_context>
chip_gen: v5e
topology: v5e:2x2
jax: 0.10.0
libtpu: 0.0.40
codegen_flags: <defaults>
</compile_context>

<pallas_src>
import functools

import jax
import jax.numpy as jnp
from jax.experimental import pallas as pl
from jax.experimental.pallas import tpu as pltpu


def _round_up(a, m):
    return (a + m - 1) // m * m


# ----------------------------- Pallas kernel --------------------------------
def _prosody_kernel(seg_len, n_seg, len_ref, x_ref, w_ref, p_ref, o_ref):
    # seg_len: static int, packed per-batch segment length Tp = T + K - 1
    # n_seg:   static int, number of batch segments (B)
    # len_ref: (B,) int32 in SMEM (scalar prefetch) -- valid frames per batch
    # x_ref:   (1, H, T_blk + K - 1)  haloed packed input window (time on lanes)
    # w_ref:   (K, F, H)              per-tap conv weights
    # p_ref:   (F, 4) f32  [:,0]=conv bias  [:,1]=w_eff = ln_g * lin_w
    #                      [0,2]=sum(w_eff) [0,3]=sum(ln_b*lin_w)+lin_b
    # o_ref:   (1, T_blk) f32         lane-dense output block
    T_blk = o_ref.shape[-1]
    K = w_ref.shape[0]

    # Conv1d(H->F, K, 'same') as K shifted MXU matmuls, f32 accumulation.
    acc = jnp.dot(w_ref[0], x_ref[0, :, pl.ds(0, T_blk)],
                  preferred_element_type=jnp.float32)
    for k in range(1, K):                         # K is tiny & static: unrolled
        acc = acc + jnp.dot(w_ref[k], x_ref[0, :, pl.ds(k, T_blk)],
                            preferred_element_type=jnp.float32)
    y = jnp.maximum(acc + p_ref[:, 0:1], 0.0)     # + conv bias, ReLU  (F, T_blk)

    # Fused LayerNorm(F) + affine + Linear(F->1): y_n is never materialized.
    #   z = rsqrt(var+eps) * (sum(w_eff*y) - mean*sum(w_eff)) + b_eff
    inv_f = 1.0 / y.shape[0]
    mean = jnp.sum(y, axis=0, keepdims=True) * inv_f             # (1, T_blk)
    ex2 = jnp.sum(y * y, axis=0, keepdims=True) * inv_f
    sw = jnp.sum(y * p_ref[:, 1:2], axis=0, keepdims=True)
    var = jnp.maximum(ex2 - mean * mean, 0.0)
    z = (sw - mean * p_ref[0:1, 2:3]) * jax.lax.rsqrt(var + 1e-5) + p_ref[0:1, 3:4]
    e = jax.nn.sigmoid(z)                                        # (1, T_blk)

    # masked_fill(mask, 0): rebuild mask per lane from the SMEM lengths.
    # Packed lane j is a valid frame of batch b iff j in [b*Tp, b*Tp + len[b]).
    # (This also zeros the K-1 garbage tail columns of each segment and the
    # lane padding, so the wrapper only has to slice them away.)
    j = pl.program_id(0) * T_blk + jax.lax.broadcasted_iota(jnp.int32, (1, T_blk), 1)
    keep = None
    for b in range(n_seg):                        # static, tiny loop over batches
        start = b * seg_len
        kb = jnp.logical_and(j >= start, j < start + len_ref[b])
        keep = kb if keep is None else jnp.logical_or(keep, kb)
    o_ref[...] = jnp.where(keep, e, 0.0)


# ------------------------------ JAX wrapper ----------------------------------
def prosody_decoder_forward(x, lengths, params, *, use_bf16_matmul=False,
                            max_time_block=512):
    """x: [B, T, H] float32, lengths: [B] int (frames >= length are masked).

    Returns emb: [B, T] float32 (sigmoid prob per frame, masked to 0).
    """
    B, T, H = x.shape
    conv_w = params["conv_w"]                      # (F, H, K)  PyTorch layout
    F_, _, K = conv_w.shape
    assert K % 2 == 1, "kernel_size must be odd for symmetric 'same' padding"
    pad = (K - 1) // 2
    Tp = T + K - 1                                 # per-batch padded segment
    Lp = B * Tp                                    # packed width (b-major, t-minor)

    # Time-block size: >=128 lanes, <= max_time_block; single block when small.
    if Lp >= max_time_block:
        T_blk = max_time_block
    else:
        T_blk = _round_up(Lp, 128)
    W = _round_up(Lp, T_blk)
    nb = W // T_blk

    # Pack: (H, packed time) with the per-batch 'same' zero halo baked in.
    x_pad = jnp.pad(x, ((0, 0), (pad, pad), (0, 0)))             # (B, Tp, H)
    x_packed = jnp.transpose(x_pad, (2, 0, 1)).reshape(H, Lp)    # (H, B*Tp)
    x_packed = jnp.pad(x_packed, ((0, 0), (0, W + K - 1 - Lp)))
    # Per-block haloed windows (overhead: K-1 extra columns per block, ~1-2%).
    x_blocks = jnp.stack(
        [x_packed[:, i * T_blk: i * T_blk + T_blk + K - 1] for i in range(nb)],
        axis=0)                                                  # (nb, H, T_blk+K-1)

    w_taps = jnp.transpose(conv_w, (2, 0, 1))                    # (K, F, H)

    # Fold LayerNorm affine + final Linear(F->1) into per-channel weight + scalars.
    lin_w = params["lin_w"].reshape(F_)
    w_eff = params["ln_g"] * lin_w
    w_sum = jnp.sum(w_eff)
    b_eff = jnp.sum(params["ln_b"] * lin_w) + params["lin_b"][0]
    p = jnp.stack(
        [params["conv_b"], w_eff,
         jnp.broadcast_to(w_sum, (F_,)),
         jnp.broadcast_to(b_eff, (F_,))],
        axis=-1).astype(jnp.float32)                             # (F, 4)

    if use_bf16_matmul:   # halves the dominant HBM stream; valid on v5e/v6e/v7x
        x_blocks = x_blocks.astype(jnp.bfloat16)
        w_taps = w_taps.astype(jnp.bfloat16)

    kernel = functools.partial(_prosody_kernel, Tp, B)
    out = pl.pallas_call(
        kernel,
        out_shape=jax.ShapeDtypeStruct((1, W), jnp.float32),
        grid_spec=pltpu.PrefetchScalarGridSpec(
            num_scalar_prefetch=1,
            grid=(nb,),
            in_specs=[
                pl.BlockSpec((1, H, T_blk + K - 1), lambda tb, lens: (tb, 0, 0)),
                pl.BlockSpec((K, F_, H), lambda tb, lens: (0, 0, 0)),
                pl.BlockSpec((F_, 4), lambda tb, lens: (0, 0)),
            ],
            out_specs=pl.BlockSpec((1, T_blk), lambda tb, lens: (0, tb)),
        ),
        compiler_params=pltpu.CompilerParams(
            dimension_semantics=("parallel",)),   # time blocks are independent
    )(lengths.astype(jnp.int32), x_blocks, w_taps, p)

    # Unpack: drop the K-1 tail columns of each batch segment and lane padding.
    return out[0, :Lp].reshape(B, Tp)[:, :T]


# --------------------------- pure-JAX reference -------------------------------
def prosody_decoder_reference(x, lengths, params):
    conv_w = params["conv_w"]
    F_, H, K = conv_w.shape
    pad = (K - 1) // 2
    xt = jnp.transpose(x, (0, 2, 1))                   # [B, H, T]
    y = jax.lax.conv_general_dilated(
        xt, conv_w, window_strides=(1,), padding=[(pad, pad)],
        dimension_numbers=("NCH", "OIH", "NCH"))
    y = y + params["conv_b"][None, :, None]
    y = jnp.transpose(y, (0, 2, 1))                    # [B, T, F]
    y = jnp.maximum(y, 0.0)
    mean = jnp.mean(y, axis=-1, keepdims=True)
    var = jnp.mean(jnp.square(y - mean), axis=-1, keepdims=True)
    y = (y - mean) * jax.lax.rsqrt(var + 1e-5)
    y = y * params["ln_g"] + params["ln_b"]
    z = jnp.einsum("btf,f->bt", y, params["lin_w"].reshape(-1)) + params["lin_b"][0]
    e = jax.nn.sigmoid(z)
    T = x.shape[1]
    mask = jnp.arange(T)[None, :] >= lengths[:, None]
    return jnp.where(mask, 0.0, e)


# ---------------------------------- main --------------------------------------
if __name__ == "__main__":
    # Hyper-params implied by the module (small but TPU-friendly):
    #   hp.encoder_hidden = 32, hp.variance_predictor_filter_size = 32,
    #   hp.variance_predictor_kernel_size = 3
    B, T, H, F, K = 2, 64, 32, 32, 3

    key = jax.random.PRNGKey(0)
    k_x, k_cw, k_cb, k_g, k_b, k_lw, k_lb = jax.random.split(key, 7)

    x = jax.random.normal(k_x, (B, T, H), dtype=jnp.float32)
    lengths = jnp.array([48, 25], dtype=jnp.int32)     # frames >= length masked

    params = {
        "conv_w": 0.1 * jax.random.normal(k_cw, (F, H, K), jnp.float32),
        "conv_b": 0.1 * jax.random.normal(k_cb, (F,), jnp.float32),
        "ln_g": 1.0 + 0.05 * jax.random.normal(k_g, (F,), jnp.float32),
        "ln_b": 0.05 * jax.random.normal(k_b, (F,), jnp.float32),
        "lin_w": 0.1 * jax.random.normal(k_lw, (1, F), jnp.float32),
        "lin_b": 0.1 * jax.random.normal(k_lb, (1,), jnp.float32),
    }

    ref = prosody_decoder_reference(x, lengths, params)

    # f32 MXU path: matches the module numerics (fused one-pass LN statistics).
    emb = prosody_decoder_forward(x, lengths, params, use_bf16_matmul=False)
    emb = jax.block_until_ready(emb)
    assert emb.shape == (B, T)
    if not jnp.allclose(emb, ref, atol=1e-4, rtol=1e-4):
        raise AssertionError("Pallas kernel (f32) does not match JAX reference")

    # bf16-MXU-input path (all generations), f32 accumulation + f32 LayerNorm.
    emb_bf16 = prosody_decoder_forward(x, lengths, params, use_bf16_matmul=True)
    emb_bf16 = jax.block_until_ready(emb_bf16)
    if not jnp.allclose(emb_bf16, ref, atol=3e-2, rtol=3e-2):
        raise AssertionError("Pallas kernel (bf16 matmul) deviates too much")

    print("KERNEL_OK")
</pallas_src>

<mosaic_0001>
module attributes {stable_mosaic.version = 11 : i64} {
  func.func @_prosody_kernel(%arg0: i32, %arg1: memref<2xi32, #tpu.memory_space<smem>>, %arg2: memref<1x32x258xf32, #tpu.memory_space<vmem>>, %arg3: memref<3x32x32xf32, #tpu.memory_space<vmem>>, %arg4: memref<32x4xf32, #tpu.memory_space<vmem>>, %arg5: memref<1x256xf32, #tpu.memory_space<vmem>>) attributes {dimension_semantics = [#tpu.dimension_semantics<parallel>], iteration_bounds = array<i64: 1>, scalar_prefetch = 1 : i64, scratch_operands = 0 : i64, tpu.core_type = #tpu.core_type<tc>, window_params = [{transform_indices = @transform_0, window_bounds = array<i64: 1, 32, 258>}, {pipeline_mode = #tpu.pipeline_mode<synchronous>, transform_indices = @transform_1, window_bounds = array<i64: 3, 32, 32>}, {pipeline_mode = #tpu.pipeline_mode<synchronous>, transform_indices = @transform_2, window_bounds = array<i64: 32, 4>}, {transform_indices = @transform_3, window_bounds = array<i64: 1, 256>}]} {
    %c0 = arith.constant 0 : index
    %c0_0 = arith.constant 0 : index
    %c0_1 = arith.constant 0 : index
    %0 = vector.load %arg3[%c0, %c0_0, %c0_1] : memref<3x32x32xf32, #tpu.memory_space<vmem>>, vector<1x32x32xf32>
    %1 = vector.shape_cast %0 : vector<1x32x32xf32> to vector<32x32xf32>
    %c0_2 = arith.constant 0 : index
    %c0_3 = arith.constant 0 : index
    %c0_4 = arith.constant 0 : index
    %2 = vector.load %arg2[%c0_2, %c0_3, %c0_4] : memref<1x32x258xf32, #tpu.memory_space<vmem>>, vector<1x32x256xf32>
    %3 = vector.shape_cast %2 : vector<1x32x256xf32> to vector<32x256xf32>
    %cst = arith.constant dense<0.000000e+00> : vector<32x256xf32>
    %4 = tpu.matmul %1, %3, %cst {dimension_numbers = #tpu.dot_dimension_numbers<[1], [0], [0], [1], [0, 0, 1, 1], [], []>} : vector<32x32xf32>, vector<32x256xf32>, vector<32x256xf32> -> vector<32x256xf32>
    %c1 = arith.constant 1 : index
    %c0_5 = arith.constant 0 : index
    %c0_6 = arith.constant 0 : index
    %5 = vector.load %arg3[%c1, %c0_5, %c0_6] : memref<3x32x32xf32, #tpu.memory_space<vmem>>, vector<1x32x32xf32>
    %6 = vector.shape_cast %5 : vector<1x32x32xf32> to vector<32x32xf32>
    %c0_7 = arith.constant 0 : index
    %c0_8 = arith.constant 0 : index
    %c1_9 = arith.constant 1 : index
    %7 = vector.load %arg2[%c0_7, %c0_8, %c1_9] : memref<1x32x258xf32, #tpu.memory_space<vmem>>, vector<1x32x256xf32>
    %8 = vector.shape_cast %7 : vector<1x32x256xf32> to vector<32x256xf32>
    %cst_10 = arith.constant dense<0.000000e+00> : vector<32x256xf32>
    %9 = tpu.matmul %6, %8, %cst_10 {dimension_numbers = #tpu.dot_dimension_numbers<[1], [0], [0], [1], [0, 0, 1, 1], [], []>} : vector<32x32xf32>, vector<32x256xf32>, vector<32x256xf32> -> vector<32x256xf32>
    %10 = arith.addf %4, %9 : vector<32x256xf32>
    %c2 = arith.constant 2 : index
    %c0_11 = arith.constant 0 : index
    %c0_12 = arith.constant 0 : index
    %11 = vector.load %arg3[%c2, %c0_11, %c0_12] : memref<3x32x32xf32, #tpu.memory_space<vmem>>, vector<1x32x32xf32>
    %12 = vector.shape_cast %11 : vector<1x32x32xf32> to vector<32x32xf32>
    %c0_13 = arith.constant 0 : index
    %c0_14 = arith.constant 0 : index
    %c2_15 = arith.constant 2 : index
    %13 = vector.load %arg2[%c0_13, %c0_14, %c2_15] : memref<1x32x258xf32, #tpu.memory_space<vmem>>, vector<1x32x256xf32>
    %14 = vector.shape_cast %13 : vector<1x32x256xf32> to vector<32x256xf32>
    %cst_16 = arith.constant dense<0.000000e+00> : vector<32x256xf32>
    %15 = tpu.matmul %12, %14, %cst_16 {dimension_numbers = #tpu.dot_dimension_numbers<[1], [0], [0], [1], [0, 0, 1, 1], [], []>} : vector<32x32xf32>, vector<32x256xf32>, vector<32x256xf32> -> vector<32x256xf32>
    %16 = arith.addf %10, %15 : vector<32x256xf32>
    %c0_17 = arith.constant 0 : index
    %c0_18 = arith.constant 0 : index
    %17 = vector.load %arg4[%c0_17, %c0_18] : memref<32x4xf32, #tpu.memory_space<vmem>>, vector<32x1xf32>
    %18 = vector.broadcast %17 : vector<32x1xf32> to vector<32x256xf32>
    %19 = arith.addf %16, %18 : vector<32x256xf32>
    %cst_19 = arith.constant 0.000000e+00 : f32
    %20 = vector.broadcast %cst_19 : f32 to vector<32x256xf32>
    %21 = arith.maximumf %19, %20 : vector<32x256xf32>
    %cst_20 = arith.constant dense<0.000000e+00> : vector<256xf32>
    %22 = vector.multi_reduction <add>, %21, %cst_20 [0] : vector<32x256xf32> to vector<256xf32>
    %23 = vector.shape_cast %22 : vector<256xf32> to vector<1x256xf32>
    %cst_21 = arith.constant 3.125000e-02 : f32
    %24 = vector.broadcast %cst_21 : f32 to vector<1x256xf32>
    %25 = arith.mulf %23, %24 : vector<1x256xf32>
    %26 = arith.mulf %21, %21 : vector<32x256xf32>
    %cst_22 = arith.constant dense<0.000000e+00> : vector<256xf32>
    %27 = vector.multi_reduction <add>, %26, %cst_22 [0] : vector<32x256xf32> to vector<256xf32>
    %28 = vector.shape_cast %27 : vector<256xf32> to vector<1x256xf32>
    %cst_23 = arith.constant 3.125000e-02 : f32
    %29 = vector.broadcast %cst_23 : f32 to vector<1x256xf32>
    %30 = arith.mulf %28, %29 : vector<1x256xf32>
    %c0_24 = arith.constant 0 : index
    %c1_25 = arith.constant 1 : index
    %31 = vector.load %arg4[%c0_24, %c1_25] : memref<32x4xf32, #tpu.memory_space<vmem>>, vector<32x1xf32>
    %32 = vector.broadcast %31 : vector<32x1xf32> to vector<32x256xf32>
    %33 = arith.mulf %21, %32 : vector<32x256xf32>
    %cst_26 = arith.constant dense<0.000000e+00> : vector<256xf32>
    %34 = vector.multi_reduction <add>, %33, %cst_26 [0] : vector<32x256xf32> to vector<256xf32>
    %35 = vector.shape_cast %34 : vector<256xf32> to vector<1x256xf32>
    %36 = arith.mulf %25, %25 : vector<1x256xf32>
    %37 = arith.subf %30, %36 : vector<1x256xf32>
    %cst_27 = arith.constant 0.000000e+00 : f32
    %38 = vector.broadcast %cst_27 : f32 to vector<1x256xf32>
    %39 = arith.maximumf %37, %38 : vector<1x256xf32>
    %c0_28 = arith.constant 0 : index
    %c2_29 = arith.constant 2 : index
    %40 = vector.load %arg4[%c0_28, %c2_29] : memref<32x4xf32, #tpu.memory_space<vmem>>, vector<1x1xf32>
    %41 = vector.broadcast %40 : vector<1x1xf32> to vector<1x256xf32>
    %42 = arith.mulf %25, %41 : vector<1x256xf32>
    %43 = arith.subf %35, %42 : vector<1x256xf32>
    %cst_30 = arith.constant 9.99999974E-6 : f32
    %44 = vector.broadcast %cst_30 : f32 to vector<1x256xf32>
    %45 = arith.addf %39, %44 : vector<1x256xf32>
    %46 = math.rsqrt %45 : vector<1x256xf32>
    %47 = arith.mulf %43, %46 : vector<1x256xf32>
    %c0_31 = arith.constant 0 : index
    %c3 = arith.constant 3 : index
    %48 = vector.load %arg4[%c0_31, %c3] : memref<32x4xf32, #tpu.memory_space<vmem>>, vector<1x1xf32>
    %49 = vector.broadcast %48 : vector<1x1xf32> to vector<1x256xf32>
    %50 = arith.addf %47, %49 : vector<1x256xf32>
    %51 = arith.negf %50 : vector<1x256xf32>
    %52 = math.exp %51 : vector<1x256xf32>
    %cst_32 = arith.constant 1.000000e+00 : f32
    %53 = vector.broadcast %cst_32 : f32 to vector<1x256xf32>
    %54 = arith.addf %53, %52 : vector<1x256xf32>
    %55 = arith.divf %53, %54 : vector<1x256xf32>
    %c256_i32 = arith.constant 256 : i32
    %56 = arith.muli %arg0, %c256_i32 : i32
    %57 = tpu.iota {dimensions = array<i32: 1>} : vector<1x256xi32>
    %58 = vector.broadcast %56 : i32 to vector<1x256xi32>
    %59 = arith.addi %58, %57 : vector<1x256xi32>
    %c0_i32 = arith.constant 0 : i32
    %60 = vector.broadcast %c0_i32 : i32 to vector<1x256xi32>
    %61 = arith.cmpi sge, %59, %60 : vector<1x256xi32>
    %c0_33 = arith.constant 0 : index
    %62 = memref.load %arg1[%c0_33] : memref<2xi32, #tpu.memory_space<smem>>
    %c0_i32_34 = arith.constant 0 : i32
    %63 = arith.addi %c0_i32_34, %62 : i32
    %64 = vector.broadcast %63 : i32 to vector<1x256xi32>
    %65 = arith.cmpi slt, %59, %64 : vector<1x256xi32>
    %66 = arith.andi %61, %65 : vector<1x256xi1>
    %c66_i32 = arith.constant 66 : i32
    %67 = vector.broadcast %c66_i32 : i32 to vector<1x256xi32>
    %68 = arith.cmpi sge, %59, %67 : vector<1x256xi32>
    %c1_35 = arith.constant 1 : index
    %69 = memref.load %arg1[%c1_35] : memref<2xi32, #tpu.memory_space<smem>>
    %c66_i32_36 = arith.constant 66 : i32
    %70 = arith.addi %c66_i32_36, %69 : i32
    %71 = vector.broadcast %70 : i32 to vector<1x256xi32>
    %72 = arith.cmpi slt, %59, %71 : vector<1x256xi32>
    %73 = arith.andi %68, %72 : vector<1x256xi1>
    %74 = arith.ori %66, %73 : vector<1x256xi1>
    %cst_37 = arith.constant 0.000000e+00 : f32
    %75 = vector.broadcast %cst_37 : f32 to vector<1x256xf32>
    %76 = arith.select %74, %55, %75 : vector<1x256xi1>, vector<1x256xf32>
    %c0_38 = arith.constant 0 : index
    %c0_39 = arith.constant 0 : index
    %77 = vector.load %arg5[%c0_38, %c0_39] : memref<1x256xf32, #tpu.memory_space<vmem>>, vector<1x256xf32>
    tpu.vector_store %arg5[%c0_38, %c0_39], %76 {strides = array<i32>} : memref<1x256xf32, #tpu.memory_space<vmem>>, vector<1x256xf32>,
    return
  }
  func.func @transform_0(%arg0: i32, %arg1: memref<2xi32, #tpu.memory_space<smem>>) -> (i32, i32, i32) {
    %c0_i32 = arith.constant 0 : i32
    %c0_i32_0 = arith.constant 0 : i32
    %c0_i32_1 = arith.constant 0 : i32
    return %arg0, %c0_i32, %c0_i32_0 : i32, i32, i32
  }
  func.func @transform_1(%arg0: i32, %arg1: memref<2xi32, #tpu.memory_space<smem>>) -> (i32, i32, i32) {
    %c0_i32 = arith.constant 0 : i32
    %c0_i32_0 = arith.constant 0 : i32
    %c0_i32_1 = arith.constant 0 : i32
    %c0_i32_2 = arith.constant 0 : i32
    return %c0_i32, %c0_i32_0, %c0_i32_1 : i32, i32, i32
  }
  func.func @transform_2(%arg0: i32, %arg1: memref<2xi32, #tpu.memory_space<smem>>) -> (i32, i32) {
    %c0_i32 = arith.constant 0 : i32
    %c0_i32_0 = arith.constant 0 : i32
    %c0_i32_1 = arith.constant 0 : i32
    return %c0_i32, %c0_i32_0 : i32, i32
  }
  func.func @transform_3(%arg0: i32, %arg1: memref<2xi32, #tpu.memory_space<smem>>) -> (i32, i32) {
    %c0_i32 = arith.constant 0 : i32
    %c0_i32_0 = arith.constant 0 : i32
    return %c0_i32, %arg0 : i32, i32
  }
}

</mosaic_0001>

<bundles_post_ra>
// kernel: tpu_custom_call.1
= control target key start
LH: loop header
LB: loop body
LE: loop exit
PB: predicated region body
PF: predicated region fallthrough
CT: control target
= control target key end

     0   :  { %s888_s18 = smov [#allocation3]   ;;  %s1051_s0 = inlined_call_operand.vmem [shape: s32[2], index: 0, kind: input, shape index: {}]   ;;  %s1052_s1 = inlined_call_operand.hbm [shape: f32[1,32,258], index: 1, kind: input, shape index: {}]   ;;  %s1053_s2 = inlined_call_operand.hbm [shape: f32[3,32,32], index: 2, kind: input, shape index: {}]   ;;  %s1054_s3 = inlined_call_operand.vmem [shape: f32[32,4], index: 3, kind: input, shape index: {}]   ;;  %s1055_s4 = inlined_call_operand.hbm [shape: f32[1,256], index: 4, kind: output, shape index: {}]  }
   0x1   :  { %s10_s17 = sshll.u32 %s1051_s0, 4  ;;  %s11_s17 = int_to_ptr.vmem [resolvable:$true] %s10_s17 }
   0x2   :  { %13 = dma.vmem_to_smem %s11_s17, 16, %s888_s18, [#allocation2] }
   0x3   :  { %880 = dma.done.wait [#allocation2], 16 }
   0x4   :  { %881 = vsyncadd [#allocation2], 4294967280 }
   0x5   :  { %16 = sfence }
   0x6   :  { %17 = vsyncpa [#allocation5], 0 }
   0x7   :  { %18 = vsyncpa [#allocation8], 0 }
   0x8   :  { %19 = vsyncpa [#allocation6], 0  ;;  %s24_s21 = sshll.u32 %s1052_s1, 4  ;;  %s889_s22 = smov [#allocation4]   ;;  %s25_s21 = int_to_ptr.hbm [resolvable:$true] %s24_s21 }
   0x9   :  { %s26_s23 = sshll.u32 %s889_s22, 4  ;;  %s37_s0 = sshll.u32 %s1053_s2, 4  ;;  %s27_s23 = int_to_ptr.vmem [resolvable:$true] %s26_s23  ;;  %s38_s0 = int_to_ptr.hbm [resolvable:$true] %s37_s0 }
   0xa   :  { %s890_s26 = smov 384   ;;  %s891_s27 = smov 24  }
   0xb   :  { %32 = dma.hbm_to_vmem [thread:$0]  %s25_s21, 1536, %s27_s23, [#allocation5], %s890_s26, %s890_s26, %s891_s27  }
   0xc   :  { %s892_s28 = smov [#allocation7]   ;;  %s893_s30 = smov 128  }
   0xd   :  { %s39_s29 = sshll.u32 %s892_s28, 4  ;;  %s894_s5 = smov 8   ;;  %s40_s29 = int_to_ptr.vmem [resolvable:$true] %s39_s29 }
   0xe   :  { %45 = dma.hbm_to_vmem [thread:$0]  %s38_s0, 1536, %s40_s29, [#allocation8], %s893_s30, %s893_s30, %s894_s5  }
   0xf   :  { %882 = dma.done.wait [#allocation5], 1536  }
  0x10   :  { %883 = vsyncadd [#allocation5], 4294965760 }
  0x11   :  { %884 = dma.done.wait [#allocation8], 1536  }
  0x12   :  { %885 = vsyncadd [#allocation8], 4294965760  ;;  %v936_v0 = vld [vmem:[#allocation4 + $0x50] sm:$0xff]  ;;  %v76_v1 = vld [vmem:[#allocation4 + $0x58] sm:$0xff]  ;;  %s895_s1 = smov 127   ;;  %s896_s2 = smov 126  }
  0x13   :  { %v938_v2 = vld [vmem:[#allocation4 + $0x20] sm:$0xff]  ;;  %v715_v3 = vpack.i.bf16 %v76_v1, %v936_v0  ;;  %v941_v4 = vld [vmem:[#allocation4 + $0x48] sm:$0xff]  ;;  %v73_v7 = vld [vmem:[#allocation4 + $0x10] sm:$0xff]  ;;  %vm113_vm0 = vcmask 1039360   ;;  %vm130_vm1 = vcmask 261120   ;;  %vm300_vm2 = vcmask 1031168  }
  0x14   :  { %v725_v5 = vpack.i.bf16 %v938_v2, %v941_v4  ;;  %v945_v6 = vld [vmem:[#allocation4 + $0x8] sm:$0xff]  ;;  %v947_v8 = vld [vmem:[#allocation4 + $0x38] sm:$0xff]  ;;  %v75_v9 = vld [vmem:[#allocation4 + $0x40] sm:$0xff]  ;;  %v897_v63 = vmov 0   ;;  %s1027_s16 = sld [smem:[#allocation3]]  ;;  %s901_s18 = smov [#allocation9]  }
  0x15   :  { %716 = vrot.lane.b32.xlu0 %v715_v3, %s895_s1  ;;  %v735_v10 = vpack.i.bf16 %v73_v7, %v945_v6  ;;  %v950_v11 = vld [vmem:[#allocation4 + $0x30] sm:$0xff]  ;;  %v74_v12 = vld [vmem:[#allocation4 + $0x28] sm:$0xff]  ;;  %v720_v13 = vpack.i.bf16 %v75_v9, %v947_v8  ;;  %v953_v14 = vld [vmem:[#allocation4] sm:$0xff]  ;;  %776 = vset.pattern.permute.xlu1 %v897_v63  ;;  %s653_s19 = sshll.u32 %s901_s18, 4  ;;  %s655_s22 = sshll.u32 %s1055_s4, 4  ;;  %s654_s19 = int_to_ptr.vmem [resolvable:$true] %s653_s19  ;;  %s656_s22 = int_to_ptr.hbm [resolvable:$true] %s655_s22 }
  0x16   :  { %726 = vrot.lane.b32.xlu1 %v725_v5, %s895_s1  ;;  %v955_v15 = vld [vmem:[#allocation4 + $0x18] sm:$0xff]  ;;  %v730_v16 = vpack.i.bf16 %v950_v11, %v74_v12  ;;  %v71_v45 = vld [vmem:[#allocation7 + $0x30] sm:$0xff]  ;;  %v69_v55 = vld [vmem:[#allocation7 + $0x20] sm:$0xff]  ;;  %775 = vset.pattern.permute.xlu0 %v897_v63 }
  0x17   :  { %736 = vrot.lane.b32.xlu2 %v735_v10, %s895_s1  ;;  %v740_v17 = vpack.i.bf16 %v953_v14, %v955_v15  ;;  %v395_v58 = vld [vmem:[%s1054_s3] sm:$0xff]  ;;  %v72_v61 = vld [vmem:[#allocation7 + $0x38] sm:$0xff] }
  0x18   :  { %777 = vset.pattern.permute.xlu2 %v897_v63 }
  0x1d   :  { %721 = vrot.lane.b32.xlu0 %v720_v13, %s895_s1 }
  0x1e   :  { %731 = vrot.lane.b32.xlu1 %v730_v16, %s895_s1 }
  0x1f   :  { %741 = vrot.lane.b32.xlu2 %v740_v17, %s895_s1 }
  0x25   :  { %746 = vrot.lane.b32.xlu0 %v715_v3, %s896_s2 }
  0x26   :  { %751 = vrot.lane.b32.xlu1 %v720_v13, %s896_s2  ;;  %v56_v13 = vld [vmem:[#allocation7] sm:$0xff] }
  0x27   :  { %756 = vrot.lane.b32.xlu2 %v725_v5, %s896_s2 }
  0x2d   :  { %761 = vrot.lane.b32.xlu0 %v730_v16, %s896_s2  ;;  %v398_v16 = vld [vmem:[%s1054_s3 + $0x18] sm:$0xff] }
  0x2e   :  { %766 = vrot.lane.b32.xlu1 %v735_v10, %s896_s2 }
  0x2f   :  { %771 = vrot.lane.b32.xlu2 %v740_v17, %s896_s2  ;;  %v272_v17 = vld [vmem:[#allocation7 + $0x40] sm:$0xff] }
  0x35   :  { %401 = vperm.xlu0 %775, %v395_v58  }
  0x71   :  { %v737_v18 = vpop.permute.xlu2 %736 }
  0x72   :  { %v739_v36 = vunpack.i.h.bf16 %v737_v18  ;;  %v738_v37 = vunpack.i.l.bf16 %v737_v18  ;;  %v57_v18 = vld [vmem:[#allocation7 + $0x8] sm:$0xff] }
  0x74   :  { %v115_v44 = vsel %vm113_vm0, %v738_v37, %v739_v36 }
  0x79   :  { %v742_v24 = vpop.permute.xlu2 %741 }
  0x7a   :  { %v743_v32 = vunpack.i.l.bf16 %v742_v24  ;;  %v744_v39 = vunpack.i.h.bf16 %v742_v24  ;;  %v59_v24 = vld [vmem:[#allocation7 + $0x18] sm:$0xff] }
  0x7c   :  { %v114_v47 = vsel %vm113_vm0, %v744_v39, %v738_v37 }
  0x81   :  { %v962_v35 = vpop.permute.xlu2 %756 }
  0x82   :  { %v758_v43 = vunpack.i.l.bf16 %v962_v35  ;;  %v759_v59 = vunpack.i.h.bf16 %v962_v35 }
  0x87   :  { %v717_v19 = vpop.permute.xlu0 %716 }
  0x88   :  { %v719_v20 = vunpack.i.h.bf16 %v717_v19  ;;  %v718_v21 = vunpack.i.l.bf16 %v717_v19  ;;  %v727_v22 = vpop.permute.xlu1 %726  ;;  %v273_v19 = vld [vmem:[#allocation7 + $0x48] sm:$0xff] }
  0x89   :  { %v728_v23 = vunpack.i.l.bf16 %v727_v22  ;;  %v729_v31 = vunpack.i.h.bf16 %v727_v22  ;;  %v772_v56 = vpop.permute.xlu2 %771  ;;  %v531_v22 = vld [vmem:[%s1054_s3] sm:$0x1] }
  0x8a   :  { %v121_v25 = vsel %vm113_vm0, %v718_v21, %v719_v20  ;;  %v773_v60 = vunpack.i.l.bf16 %v772_v56  ;;  %v58_v20 = vld [vmem:[#allocation7 + $0x10] sm:$0xff] }
  0x8b   :  { %v120_v26 = vsel %vm113_vm0, %v728_v23, %v718_v21  ;;  %184 = vmatpush.msra.mxu1 %v121_v25  ;;  %697 = vmatpush.msra.mxu3 %v121_v25  ;;  %v116_v42 = vsel %vm113_vm0, %v743_v32, %v729_v31  ;;  %v274_v21 = vld [vmem:[#allocation7 + $0x50] sm:$0xff]  ;;  %v899_v23 = vmov 2   ;;  %v275_v25 = vld [vmem:[#allocation7 + $0x58] sm:$0xff] }
  0x8c   :  { %155 = vmatpush.msra.mxu0 %v120_v26  ;;  %693 = vmatpush.msra.mxu2 %v120_v26  ;;  %v303_v10 = vsel %vm300_vm2, %v773_v60, %v759_v59  ;;  %v900_v26 = vmov 3  }
  0x8f   :  { %v722_v27 = vpop.permute.xlu0 %721 }
  0x90   :  { %v724_v28 = vunpack.i.h.bf16 %v722_v27  ;;  %v723_v29 = vunpack.i.l.bf16 %v722_v27  ;;  %v732_v30 = vpop.permute.xlu1 %731 }
  0x91   :  { %v734_v33 = vunpack.i.h.bf16 %v732_v30  ;;  %v733_v34 = vunpack.i.l.bf16 %v732_v30 }
  0x92   :  { %v119_v38 = vsel %vm113_vm0, %v723_v29, %v724_v28 }
  0x93   :  { %v118_v40 = vsel %vm113_vm0, %v734_v33, %v723_v29  ;;  %185 = vmatpush.msra.mxu1 %v119_v38  ;;  %698 = vmatpush.msra.mxu3 %v119_v38  ;;  %v117_v41 = vsel %vm113_vm0, %v729_v31, %v733_v34 }
  0x94   :  { %156 = vmatpush.msra.mxu0 %v118_v40  ;;  %694 = vmatpush.msra.mxu2 %v118_v40 }
  0x95   :  { %186 = vmatpush.msra.mxu1 %v117_v41  ;;  %699 = vmatpush.msra.mxu3 %v117_v41 }
  0x96   :  { %157 = vmatpush.msra.mxu0 %v116_v42  ;;  %695 = vmatpush.msra.mxu2 %v116_v42 }
  0x97   :  { %v747_v46 = vpop.permute.xlu0 %746  ;;  %187 = vmatpush.msra.mxu1 %v115_v44  ;;  %700 = vmatpush.msra.mxu3 %v115_v44 }
  0x98   :  { %v749_v48 = vunpack.i.h.bf16 %v747_v46  ;;  %v748_v49 = vunpack.i.l.bf16 %v747_v46  ;;  %158 = vmatpush.msra.mxu0 %v114_v47  ;;  %696 = vmatpush.msra.mxu2 %v114_v47  ;;  %v752_v50 = vpop.permute.xlu1 %751 }
  0x99   :  { %668 = vmatmul.msk.f32.vlgmr.msra.gmra.mxu2 %vm130_vm1, %v71_v45  ;;  %672 = vmatmul.msk.f32.vlgmr.msra.gmra.mxu3 %vm130_vm1, %v71_v45  ;;  %v754_v51 = vunpack.i.h.bf16 %v752_v50  ;;  %v753_v52 = vunpack.i.l.bf16 %v752_v50 }
  0x9a   :  { %254 = vmatpush.msrb.mxu3 %v936_v0  ;;  %225 = vmatpush.msrb.mxu2 %v941_v4  ;;  %v308_v53 = vsel %vm300_vm2, %v748_v49, %v749_v48  ;;  %v307_v54 = vsel %vm300_vm2, %v758_v43, %v748_v49  ;;  %v774_v0 = vunpack.i.h.bf16 %v772_v56 }
  0x9b   :  { %370 = vmatpush.msrb.mxu1 %v308_v53  ;;  %341 = vmatpush.msrb.mxu0 %v307_v54  ;;  %v306_v57 = vsel %vm300_vm2, %v753_v52, %v754_v51 }
  0x9c   :  { %255 = vmatpush.msrb.mxu3 %v947_v8  ;;  %226 = vmatpush.msrb.mxu2 %v950_v11 }
  0x9d   :  { %666 = vmatmul.msk.f32.vlgmr.msra.gmra.mxu0 %vm130_vm1, %v69_v55  ;;  %670 = vmatmul.msk.f32.vlgmr.msra.gmra.mxu1 %vm130_vm1, %v69_v55 }
  0x9e   :  { %256 = vmatpush.msrb.mxu3 %v938_v2  ;;  %371 = vmatpush.msrb.mxu1 %v306_v57  ;;  %v396_v2 = vld [vmem:[%s1054_s3 + $0x8] sm:$0xff] }
  0x9f   :  { %v762_v62 = vpop.permute.xlu0 %761  ;;  %227 = vmatpush.msrb.mxu2 %v955_v15  ;;  %406 = vperm.xlu1 %776, %v396_v2   ;;  %v898_v15 = vmov 1  }
  0xa0   :  { %v764_v1 = vunpack.i.h.bf16 %v762_v62  ;;  %v763_v3 = vunpack.i.l.bf16 %v762_v62  ;;  %257 = vmatpush.msrb.mxu3 %v945_v6  ;;  %v767_v4 = vpop.permute.xlu1 %766  ;;  %v70_v6 = vld [vmem:[#allocation7 + $0x28] sm:$0xff]  ;;  %779 = vset.pattern.permute.xlu0 %v898_v15 }
  0xa1   :  { %669 = vmatmul.msk.f32.gmra.mxu2 %vm130_vm1, %v72_v61  ;;  %673 = vmatmul.msk.f32.gmra.mxu3 %vm130_vm1, %v72_v61  ;;  %v769_v5 = vunpack.i.h.bf16 %v767_v4  ;;  %v768_v7 = vunpack.i.l.bf16 %v767_v4 }
  0xa2   :  { %v305_v8 = vsel %vm300_vm2, %v764_v1, %v753_v52  ;;  %v304_v9 = vsel %vm300_vm2, %v759_v59, %v763_v3  ;;  %228 = vmatpush.msrb.mxu2 %v953_v14  ;;  %v397_v14 = vld [vmem:[%s1054_s3 + $0x10] sm:$0xff]  ;;  %488 = vperm.xlu0 %779, %v396_v2   ;;  %s692_s3 = sld [smem:[#allocation3 + $0x1]] }
  0xa3   :  { %342 = vmatpush.msrb.mxu0 %v305_v8  ;;  %372 = vmatpush.msrb.mxu1 %v304_v9  ;;  %v302_v11 = vsel %vm300_vm2, %v768_v7, %v769_v5  ;;  %v301_v12 = vsel %vm300_vm2, %v774_v0, %v768_v7 }
  0xa4   :  { %411 = vperm.xlu2 %777, %v397_v14  }
  0xa5   :  { %343 = vmatpush.msrb.mxu0 %v303_v10  ;;  %671 = vmatmul.msk.f32.gmra.mxu1 %vm130_vm1, %v70_v6 }
  0xa6   :  { %667 = vmatmul.msk.f32.gmra.mxu0 %vm130_vm1, %v70_v6  ;;  %373 = vmatpush.msrb.mxu1 %v302_v11 }
  0xa7   :  { %344 = vmatpush.msrb.mxu0 %v301_v12  ;;  %416 = vperm.xlu1 %776, %v398_v16   ;;  %v402_v57 = vpop.permute.xlu0 %401 }
  0xa8   :  { %s627_s17 = sadd.s32 66, %s692_s3 }
  0xa9   :  { %674 = vmatmul.msk.f32.vlgmr.msrb.gmra.mxu2 %vm130_vm1, %v56_v13  ;;  %678 = vmatmul.msk.f32.vlgmr.msrb.gmra.mxu3 %vm130_vm1, %v56_v13 }
  0xaa   :  { %783 = vset.pattern.permute.xlu0 %v900_v26 }
  0xac   :  { %778 = vset.pattern.permute.xlu2 %v898_v15 }
  0xad   :  { %686 = vmatmul.msk.f32.vlgmr.msrb.gmra.mxu1 %vm130_vm1, %v272_v17  ;;  %484 = vperm.xlu2 %778, %v395_v58  }
  0xae   :  { %682 = vmatmul.msk.f32.vlgmr.msrb.gmra.mxu0 %vm130_vm1, %v272_v17 }
  0xaf   :  { %780 = vset.pattern.permute.xlu1 %v898_v15 }
  0xb0   :  { %492 = vperm.xlu1 %780, %v397_v14  }
  0xb1   :  { %675 = vmatmul.msk.f32.gmra.mxu2 %vm130_vm1, %v57_v18  ;;  %679 = vmatmul.msk.f32.gmra.mxu3 %vm130_vm1, %v57_v18 }
  0xb5   :  { %687 = vmatmul.msk.f32.gmra.mxu1 %vm130_vm1, %v273_v19  ;;  %496 = vperm.xlu2 %778, %v398_v16  }
  0xb6   :  { %683 = vmatmul.msk.f32.gmra.mxu0 %vm130_vm1, %v273_v19 }
  0xb8   :  { %781 = vset.pattern.permute.xlu1 %v899_v23 }
  0xb9   :  { %676 = vmatmul.msk.f32.gmra.mxu2 %vm130_vm1, %v58_v20  ;;  %680 = vmatmul.msk.f32.gmra.mxu3 %vm130_vm1, %v58_v20 }
  0xba   :  { %534 = vperm.xlu1 %781, %v531_v22  }
  0xbd   :  { %688 = vmatmul.msk.f32.gmra.mxu1 %vm130_vm1, %v274_v21  ;;  %782 = vset.pattern.permute.xlu2 %v900_v26 }
  0xbe   :  { %684 = vmatmul.msk.f32.gmra.mxu0 %vm130_vm1, %v274_v21  ;;  %566 = vperm.xlu2 %782, %v531_v22  }
  0xc1   :  { %677 = vmatmul.msk.f32.gmra.mxu2 %vm130_vm1, %v59_v24  ;;  %681 = vmatmul.msk.f32.gmra.mxu3 %vm130_vm1, %v59_v24 }
  0xc5   :  { %689 = vmatmul.msk.f32.gmra.mxu1 %vm130_vm1, %v275_v25 }
  0xc6   :  { %685 = vmatmul.msk.f32.gmra.mxu0 %vm130_vm1, %v275_v25 }
  0xfe   :  { %v412_v63 = vpop.permute.xlu2 %411 }
 0x111   :  { %v407_v58 = vpop.permute.xlu1 %406 }
 0x119   :  { %v417_v18 = vpop.permute.xlu1 %416 }
 0x11a   :  { %v189_v27 = vpop.f32.mrf.mxu1  ;;  %v160_v28 = vpop.f32.mrf.mxu0 }
 0x11c   :  { %v166_v29 = vpop.f32.mrf.mxu2  ;;  %v195_v30 = vpop.f32.mrf.mxu3 }
 0x122   :  { %v192_v31 = vpop.f32.mrf.mxu1 }
 0x123   :  { %v163_v32 = vpop.f32.mrf.mxu0 }
 0x124   :  { %v169_v33 = vpop.f32.mrf.mxu2  ;;  %v198_v34 = vpop.f32.mrf.mxu3 }
 0x12a   :  { %v375_v35 = vpop.f32.mrf.mxu1 }
 0x12b   :  { %v346_v36 = vpop.f32.mrf.mxu0 }
 0x12c   :  { %v230_v37 = vpop.f32.mrf.mxu2  ;;  %v259_v38 = vpop.f32.mrf.mxu3 }
 0x12d   :  { %v231_v45 = vadd.f32 %v230_v37, %v160_v28  ;;  %v260_v46 = vadd.f32 %v259_v38, %v189_v27 }
 0x12f   :  { %v387_v53 = vadd.f32 %v346_v36, %v231_v45  ;;  %v388_v54 = vadd.f32 %v375_v35, %v260_v46 }
 0x131   :  { %v419_v0 = vadd.f32 %v402_v57, %v387_v53  ;;  %v420_v1 = vadd.f32 %v402_v57, %v388_v54 }
 0x132   :  { %v378_v39 = vpop.f32.mrf.mxu1 }
 0x133   :  { %v349_v40 = vpop.f32.mrf.mxu0  ;;  %v427_v9 = vmax.f32 %v419_v0, 0.0  ;;  %v428_v10 = vmax.f32 %v420_v1, 0.0 }
 0x134   :  { %v233_v41 = vpop.f32.mrf.mxu2  ;;  %v262_v42 = vpop.f32.mrf.mxu3 }
 0x135   :  { %v234_v43 = vadd.f32 %v233_v41, %v163_v32  ;;  %v263_v44 = vadd.f32 %v262_v42, %v192_v31  ;;  %v455_v21 = vmul.f32 %v427_v9, %v427_v9  ;;  %v456_v22 = vmul.f32 %v428_v10, %v428_v10  ;;  %v485_v31 = vpop.permute.xlu2 %484  ;;  %v489_v42 = vpop.permute.xlu0 %488 }
 0x136   :  { %v500_v1 = vmul.f32 %v485_v31, %v428_v10 }
 0x137   :  { %v389_v47 = vadd.f32 %v349_v40, %v234_v43  ;;  %v390_v48 = vadd.f32 %v378_v39, %v263_v44 }
 0x139   :  { %v421_v59 = vadd.f32 %v407_v58, %v389_v47  ;;  %v422_v60 = vadd.f32 %v407_v58, %v390_v48  ;;  %v493_v47 = vpop.permute.xlu1 %492  ;;  %v499_v58 = vmul.f32 %v485_v31, %v427_v9 }
 0x13a   :  { %v381_v50 = vpop.f32.mrf.mxu1 }
 0x13b   :  { %v352_v49 = vpop.f32.mrf.mxu0  ;;  %v429_v5 = vmax.f32 %v421_v59, 0.0  ;;  %v430_v7 = vmax.f32 %v422_v60, 0.0 }
 0x13c   :  { %v236_v51 = vpop.f32.mrf.mxu2  ;;  %v265_v52 = vpop.f32.mrf.mxu3 }
 0x13d   :  { %v237_v55 = vadd.f32 %v236_v51, %v166_v29  ;;  %v266_v56 = vadd.f32 %v265_v52, %v195_v30  ;;  %v457_v16 = vmul.f32 %v429_v5, %v429_v5  ;;  %v458_v17 = vmul.f32 %v430_v7, %v430_v7 }
 0x13e   :  { %v435_v25 = vadd.f32 %v429_v5, %v427_v9  ;;  %v444_v26 = vadd.f32 %v430_v7, %v428_v10  ;;  %v501_v52 = vmul.f32 %v489_v42, %v429_v5  ;;  %v502_v59 = vmul.f32 %v489_v42, %v430_v7 }
 0x13f   :  { %v391_v61 = vadd.f32 %v352_v49, %v237_v55  ;;  %v392_v62 = vadd.f32 %v381_v50, %v266_v56  ;;  %v463_v29 = vadd.f32 %v457_v16, %v455_v21  ;;  %v472_v30 = vadd.f32 %v458_v17, %v456_v22  ;;  %v497_v55 = vpop.permute.xlu2 %496 }
 0x141   :  { %v423_v3 = vadd.f32 %v412_v63, %v391_v61  ;;  %v424_v4 = vadd.f32 %v412_v63, %v392_v62 }
 0x142   :  { %v384_v13 = vpop.f32.mrf.mxu1 }
 0x143   :  { %v431_v6 = vmax.f32 %v423_v3, 0.0  ;;  %v432_v11 = vmax.f32 %v424_v4, 0.0  ;;  %v355_v12 = vpop.f32.mrf.mxu0  ;;  %v507_v3 = vadd.f32 %v501_v52, %v499_v58 }
 0x144   :  { %v239_v2 = vpop.f32.mrf.mxu2  ;;  %v268_v8 = vpop.f32.mrf.mxu3 }
 0x145   :  { %v240_v14 = vadd.f32 %v239_v2, %v169_v33  ;;  %v269_v15 = vadd.f32 %v268_v8, %v198_v34  ;;  %v459_v23 = vmul.f32 %v431_v6, %v431_v6  ;;  %v460_v24 = vmul.f32 %v432_v11, %v432_v11 }
 0x146   :  { %v436_v32 = vadd.f32 %v435_v25, %v431_v6  ;;  %v445_v35 = vadd.f32 %v444_v26, %v432_v11  ;;  %v503_v60 = vmul.f32 %v493_v47, %v431_v6  ;;  %v504_v4 = vmul.f32 %v493_v47, %v432_v11 }
 0x147   :  { %v393_v19 = vadd.f32 %v355_v12, %v240_v14  ;;  %v394_v20 = vadd.f32 %v384_v13, %v269_v15  ;;  %v464_v36 = vadd.f32 %v463_v29, %v459_v23  ;;  %v473_v37 = vadd.f32 %v472_v30, %v460_v24 }
 0x148   :  { %v516_v14 = vadd.f32 %v502_v59, %v500_v1  ;;  %v508_v15 = vadd.f32 %v507_v3, %v503_v60 }
 0x149   :  { %v425_v27 = vadd.f32 %v417_v18, %v393_v19  ;;  %v426_v28 = vadd.f32 %v417_v18, %v394_v20 }
 0x14a   :  { %v517_v6 = vadd.f32 %v516_v14, %v504_v4 }
 0x14b   :  { %v433_v33 = vmax.f32 %v425_v27, 0.0  ;;  %v434_v34 = vmax.f32 %v426_v28, 0.0 }
 0x14d   :  { %v437_v38 = vadd.f32 %v436_v32, %v433_v33  ;;  %v461_v39 = vmul.f32 %v433_v33, %v433_v33  ;;  %v446_v40 = vadd.f32 %v445_v35, %v434_v34  ;;  %v462_v41 = vmul.f32 %v434_v34, %v434_v34 }
 0x14e   :  { %v505_v2 = vmul.f32 %v497_v55, %v433_v33  ;;  %v506_v16 = vmul.f32 %v497_v55, %v434_v34 }
 0x14f   :  { %v465_v43 = vadd.f32 %v464_v36, %v461_v39  ;;  %v474_v44 = vadd.f32 %v473_v37, %v462_v41  ;;  %v438_v45 = vrot.slane %v437_v38, 4  ;;  %v447_v46 = vrot.slane %v446_v40, 4 }
 0x150   :  { %v509_v19 = vadd.f32 %v508_v15, %v505_v2  ;;  %v518_v23 = vadd.f32 %v517_v6, %v506_v16  ;;  %v610_v15 = vlaneseq }
 0x151   :  { %v466_v48 = vrot.slane %v465_v43, 4  ;;  %v475_v49 = vrot.slane %v474_v44, 4  ;;  %v439_v50 = vadd.f32 %v438_v45, %v437_v38  ;;  %v448_v51 = vadd.f32 %v447_v46, %v446_v40  ;;  %v535_v45 = vpop.permute.xlu1 %534 }
 0x152   :  { %v510_v27 = vrot.slane %v509_v19, 4  ;;  %v519_v30 = vrot.slane %v518_v23, 4 }
 0x153   :  { %v467_v53 = vadd.f32 %v466_v48, %v465_v43  ;;  %v476_v54 = vadd.f32 %v475_v49, %v474_v44  ;;  %v440_v56 = vrot.slane %v439_v50, 2  ;;  %v449_v57 = vrot.slane %v448_v51, 2 }
 0x154   :  { %v511_v35 = vadd.f32 %v510_v27, %v509_v19  ;;  %v520_v36 = vadd.f32 %v519_v30, %v518_v23 }
 0x155   :  { %v441_v61 = vadd.f32 %v440_v56, %v439_v50  ;;  %v450_v62 = vadd.f32 %v449_v57, %v448_v51  ;;  %v468_v63 = vrot.slane %v467_v53, 2  ;;  %v477_v0 = vrot.slane %v476_v54, 2 }
 0x156   :  { %v512_v37 = vrot.slane %v511_v35, 2  ;;  %v521_v38 = vrot.slane %v520_v36, 2 }
 0x157   :  { %v442_v8 = vrot.slane %v441_v61, 1  ;;  %v451_v12 = vrot.slane %v450_v62, 1  ;;  %v469_v13 = vadd.f32 %v468_v63, %v467_v53  ;;  %v478_v5 = vadd.f32 %v477_v0, %v476_v54 }
 0x158   :  { %v513_v40 = vadd.f32 %v512_v37, %v511_v35  ;;  %v522_v42 = vadd.f32 %v521_v38, %v520_v36 }
 0x159   :  { %v443_v17 = vadd.f32 %v442_v8, %v441_v61  ;;  %v452_v18 = vadd.f32 %v451_v12, %v450_v62  ;;  %v470_v9 = vrot.slane %v469_v13, 1  ;;  %v479_v7 = vrot.slane %v478_v5, 1  ;;  %v567_v62 = vpop.permute.xlu2 %566 }
 0x15a   :  { %v514_v47 = vrot.slane %v513_v40, 1  ;;  %v523_v49 = vrot.slane %v522_v42, 1 }
 0x15b   :  { %v453_v20 = vmul.f32 0.03125, %v443_v17  ;;  %v454_v21 = vmul.f32 0.03125, %v452_v18  ;;  %v471_v22 = vadd.f32 %v470_v9, %v469_v13  ;;  %v480_v10 = vadd.f32 %v479_v7, %v478_v5 }
 0x15c   :  { %v515_v55 = vadd.f32 %v514_v47, %v513_v40  ;;  %v524_v57 = vadd.f32 %v523_v49, %v522_v42  ;;  %v611_v17 = vand.u32 127, %v610_v15  ;;  %v628_v7 = vstv %s627_s17 }
 0x15d   :  { %v481_v11 = vmul.f32 0.03125, %v471_v22  ;;  %v482_v24 = vmul.f32 0.03125, %v480_v10  ;;  %v525_v25 = vmul.f32 %v453_v20, %v453_v20  ;;  %v526_v26 = vmul.f32 %v454_v21, %v454_v21 }
 0x15e   :  { %v537_v51 = vmul.f32 %v535_v45, %v453_v20  ;;  %v538_v53 = vmul.f32 %v535_v45, %v454_v21  ;;  %v612_v9 = vadd.s32 128, %v611_v17  ;;  %v619_v20 = vstv %s1027_s16 }
 0x15f   :  { %v527_v28 = vsub.f32 %v481_v11, %v525_v25  ;;  %v528_v29 = vsub.f32 %v482_v24, %v526_v26  ;;  %vm624_vm9 = vcmp.ge.s32.totalorder %v611_v17, 66  ;;  %vm629_vm10 = vcmp.lt.s32.totalorder %v611_v17, %v628_v7 }
 0x160   :  { %v539_v59 = vsub.f32 %v515_v55, %v537_v51  ;;  %v540_v61 = vsub.f32 %v524_v57, %v538_v53  ;;  %vm621_vm11 = vcmp.lt.s32.totalorder %v612_v9, %v619_v20  ;;  %vm630_vm12 = vcmp.lt.s32.totalorder %v612_v9, %v628_v7  ;;  %vm1030_vm15 = vmand %vm624_vm9, %vm629_vm10 }
 0x161   :  { %v529_v31 = vmax.f32 %v527_v28, 0.0  ;;  %v530_v32 = vmax.f32 %v528_v29, 0.0  ;;  %vm1034_vm1 = vmor %vm621_vm11, %vm630_vm12  ;;  %vm640_vm9 = vcmask 1040384   ;;  %vm645_vm10 = vcmp.lt.s32.totalorder %v610_v15, 256 }
 0x163   :  { %v541_v33 = vadd.f32 1e-05, %v529_v31  ;;  %v542_v34 = vadd.f32 1e-05, %v530_v32 }
 0x165   :  { %784 = vrsqrt.f32 %v541_v33  ;;  %vm549_vm5 = vweird.f32 %v541_v33  ;;  %vm559_vm7 = vweird.f32 %v542_v34 }
 0x166   :  { %786 = vrsqrt.f32 %v542_v34 }
 0x16b   :  { %v785_v39 = vpop.eup %784 }
 0x16c   :  { %v787_v41 = vpop.eup %786  ;;  %v544_v43 = vmul.f32 %v785_v39, %v541_v33  ;;  %vm550_vm3 = vweird.f32 %v785_v39 }
 0x16d   :  { %v554_v44 = vmul.f32 %v787_v41, %v542_v34  ;;  %vm560_vm4 = vweird.f32 %v787_v41  ;;  %vm551_vm6 = vmor %vm549_vm5, %vm550_vm3 }
 0x16e   :  { %v545_v46 = vmul.f32 %v785_v39, %v544_v43  ;;  %vm561_vm8 = vmor %vm559_vm7, %vm560_vm4  ;;  %vm1038_vm4 = vcmp.lt.s32.totalorder %v611_v17, %v619_v20 }
 0x16f   :  { %v555_v48 = vmul.f32 %v787_v41, %v554_v44 }
 0x170   :  { %v546_v50 = vmul.f32 0.5, %v545_v46 }
 0x171   :  { %v556_v52 = vmul.f32 0.5, %v555_v48 }
 0x172   :  { %v547_v54 = vsub.f32 1.5, %v546_v50 }
 0x173   :  { %v557_v56 = vsub.f32 1.5, %v556_v52 }
 0x174   :  { %v548_v58 = vmul.f32 %v785_v39, %v547_v54 }
 0x175   :  { %v558_v60 = vmul.f32 %v787_v41, %v557_v56 }
 0x176   :  { %v552_v63 = vsel %vm551_vm6, %v785_v39, %v548_v58 }
 0x177   :  { %v562_v0 = vsel %vm561_vm8, %v787_v41, %v558_v60  ;;  %v563_v1 = vmul.f32 %v552_v63, %v539_v59  ;;  %vm633_vm8 = vmor %vm1038_vm4, %vm1030_vm15 }
 0x178   :  { %v564_v3 = vmul.f32 %v562_v0, %v540_v61 }
 0x179   :  { %v569_v4 = vadd.f32 %v567_v62, %v563_v1 }
 0x17a   :  { %v570_v2 = vadd.f32 %v567_v62, %v564_v3 }
 0x17b   :  { %v690_v8 = vmul.f32 -1.442695, %v569_v4 }
 0x17c   :  { %v691_v12 = vmul.f32 -1.442695, %v570_v2 }
 0x17d   :  { %788 = vpow2.f32 %v690_v8 }
 0x17e   :  { %790 = vpow2.f32 %v691_v12 }
 0x183   :  { %v789_v13 = vpop.eup %788 }
 0x184   :  { %v791_v5 = vpop.eup %790  ;;  %v577_v14 = vadd.f32 1.0, %v789_v13 }
 0x185   :  { %v578_v16 = vadd.f32 1.0, %v791_v5 }
 0x186   :  { %792 = vrcp.f32 %v577_v14  ;;  %v590_v24 = vand.u32 2147483648, %v577_v14  ;;  %v588_v26 = vand.u32 2147483647, %v577_v14  ;;  %vm584_vm0 = vweird.f32 %v577_v14 }
 0x187   :  { %794 = vrcp.f32 %v578_v16  ;;  %v605_v23 = vand.u32 2147483648, %v578_v16  ;;  %v603_v27 = vand.u32 2147483647, %v578_v16  ;;  %vm599_vm2 = vweird.f32 %v578_v16 }
 0x188   :  { %v591_v33 = vor.u32 1.1754944e-38, %v590_v24  ;;  %vm589_vm6 = vcmp.eq.f32.partialorder %v588_v26, 8.507059e+37 }
 0x189   :  { %v606_v34 = vor.u32 1.1754944e-38, %v605_v23  ;;  %vm604_vm7 = vcmp.eq.f32.partialorder %v603_v27, 8.507059e+37 }
 0x18c   :  { %v793_v18 = vpop.eup %792 }
 0x18d   :  { %v795_v6 = vpop.eup %794  ;;  %v580_v19 = vmul.f32 %v793_v18, %v577_v14  ;;  %vm585_vm13 = vweird.f32 %v793_v18 }
 0x18e   :  { %v595_v21 = vmul.f32 %v795_v6, %v578_v16  ;;  %vm600_vm14 = vweird.f32 %v795_v6  ;;  %vm586_vm3 = vmor %vm584_vm0, %vm585_vm13 }
 0x18f   :  { %v581_v22 = vsub.f32 1.0, %v580_v19  ;;  %vm601_vm5 = vmor %vm599_vm2, %vm600_vm14 }
 0x190   :  { %v596_v10 = vsub.f32 1.0, %v595_v21 }
 0x191   :  { %v582_v11 = vmul.f32 %v793_v18, %v581_v22 }
 0x192   :  { %v597_v25 = vmul.f32 %v795_v6, %v596_v10 }
 0x193   :  { %v583_v29 = vadd.f32 %v793_v18, %v582_v11 }
 0x194   :  { %v598_v31 = vadd.f32 %v795_v6, %v597_v25 }
 0x195   :  { %v587_v35 = vsel %vm586_vm3, %v793_v18, %v583_v29 }
 0x196   :  { %v602_v36 = vsel %vm601_vm5, %v795_v6, %v598_v31  ;;  %v592_v37 = vsel %vm589_vm6, %v591_v33, %v587_v35 }
 0x197   :  { %v607_v38 = vsel %vm604_vm7, %v606_v34, %v602_v36  ;;  %v635_v41 = vsel %vm633_vm8, %v592_v37, 0.0 }
 0x198   :  { %v636_v39 = vsel %vm1034_vm1, %v607_v38, 0.0 }
 0x199   :  { %v639_v40 = vrot.slane %v636_v39, 7 }
 0x19b   :  { %v641_v42 = vsel %vm640_vm9, %v635_v41, %v639_v40 }
 0x19c   :  { %647 = vst.msk [vmem:[#allocation9] sm:$0x3] %vm645_vm10, %v641_v42 }
 0x19d   :  { %658 = dma.vmem_to_hbm [thread:$0]  %s654_s19, 32, %s656_s22, [#allocation6]  }
 0x19e   :  { %886 = dma.done.wait [#allocation6], 32  }
 0x19f   :  { %887 = vsyncadd [#allocation6], 4294967264 }
 0x1a0   :  { %663 = vsyncpa [#allocation5], 1 }
 0x1a1   :  { %664 = vsyncpa [#allocation8], 1 }
 0x1a2   :  { %665 = vsyncpa [#allocation6], 1 }

</bundles_post_ra>
